<compile_context>
chip_gen: v7x
topology: tpu7x:2x2x1
jax: 0.10.0
libtpu: 0.0.40
codegen_flags: <defaults>
</compile_context>

<pallas_src>
import jax
import jax.numpy as jnp
from jax.experimental import pallas as pl
from jax.experimental.pallas import tpu as pltpu


_MAX_BATCH_TILE = 32  # bounds the (static) per-sample epilogue unroll; 32 samples * ~100KB ~ few MiB


def _pick_tiles(n, c, hw, itemsize, max_block_bytes, tile_hw=None, tile_b=None):
    """Choose (TB, THW) so one x block is ~max_block_bytes and stays layout-legal."""
    # Spatial tile: largest legal tile (multiple of 128, or the full extent).
    if tile_hw is not None:
        thw = min(int(tile_hw), hw)
    elif hw <= 128 or c * hw * itemsize <= max_block_bytes:
        thw = hw
    else:
        cap = (max_block_bytes // (c * itemsize)) // 128 * 128
        thw = max(128, min(cap, (hw // 128) * 128))

    # Batch tile: only worth it when a whole sample fits in one spatial block.
    if tile_b is not None:
        tb = int(tile_b)
    elif thw == hw and n > 1:
        budget = max(1, max_block_bytes // max(1, c * thw * itemsize))
        # Keep >= 2 batch blocks so the "parallel" grid axis can shard across the two
        # TensorCores on v7x (no cost on v5e/v6e); cap the epilogue unroll.
        budget = min(budget, max(1, n // 2), _MAX_BATCH_TILE)
        tb = max(d for d in range(1, budget + 1) if n % d == 0)
    else:
        tb = 1
    return tb, thw


def channel_attention(x_nchw, w1, w2, *, tile_hw=None, tile_b=None,
                      max_block_bytes=4 << 20):
    """x_nchw: (N, C, H, W); w1 = fc1.weight[:, :, 0, 0] of shape (Ch, C);
    w2 = fc2.weight[:, :, 0, 0] of shape (C, Ch).  Returns (N, C, 1, 1)."""
    N, C, H, W = x_nchw.shape
    Ch = w1.shape[0]
    assert w1.shape == (Ch, C) and w2.shape == (C, Ch) and Ch >= 1
    assert jnp.issubdtype(x_nchw.dtype, jnp.floating), "x must be floating point (-inf max fill)"
    HW = H * W

    x_flat = x_nchw.reshape(N, C, HW)          # free, layout-preserving reshape
    itemsize = jnp.dtype(x_nchw.dtype).itemsize

    TB, THW = _pick_tiles(N, C, HW, itemsize, max_block_bytes, tile_hw, tile_b)
    assert N % TB == 0, (N, TB)
    assert THW == HW or THW % 128 == 0, THW
    NB = N // TB
    num_k = pl.cdiv(HW, THW)
    needs_mask = (HW % THW) != 0
    inv_hw = 1.0 / HW

    def kernel(x_ref, w1_ref, w2_ref, o_ref, sum_sc, max_sc):
        k = pl.program_id(1)

        @pl.when(k == 0)
        def _init():
            sum_sc[...] = jnp.zeros_like(sum_sc)
            max_sc[...] = jnp.full_like(max_sc, -jnp.inf)

        def accumulate(xs, xm):
            # Streaming reduction over the spatial (lane) axis.
            # Native-dtype stream; f32 accumulation lives in scratch only.
            sum_sc[...] += jnp.sum(xs, axis=-1, keepdims=True, dtype=jnp.float32)
            max_sc[...] = jnp.maximum(
                max_sc[...],
                jnp.max(xm, axis=-1, keepdims=True).astype(jnp.float32))

        if needs_mask:
            # Unmasked hot path for every tile except the last (ragged) one.
            @pl.when(k < num_k - 1)
            def _hot():
                xb = x_ref[...]                                     # (TB, C, THW)
                accumulate(xb, xb)

            @pl.when(k == num_k - 1)
            def _ragged():
                xb = x_ref[...]
                lane = jax.lax.broadcasted_iota(jnp.int32, xb.shape, 2)
                valid = (k * THW + lane) < HW
                accumulate(jnp.where(valid, xb, jnp.zeros((), xb.dtype)),
                           jnp.where(valid, xb, jnp.full((), -jnp.inf, xb.dtype)))
        else:
            xb = x_ref[...]                                         # (TB, C, THW)
            accumulate(xb, xb)

        @pl.when(k == num_k - 1)
        def _finalize():
            w1f = w1_ref[...].astype(jnp.float32)                   # (Ch, C)
            w2f = w2_ref[...].astype(jnp.float32)                   # (C, Ch)
            inv = jnp.float32(inv_hw)
            for b in range(TB):                                     # static unroll, TB <= 32
                avg = sum_sc[b] * inv                               # (C, 1)
                pooled = jnp.concatenate([avg, max_sc[b]], axis=-1)  # (C, 2): [avg | max]
                # Fused SE-MLP over both pooled vectors at once.
                h = jnp.maximum(
                    jnp.dot(w1f, pooled, preferred_element_type=jnp.float32), 0.0)  # (Ch, 2)
                y = jnp.dot(w2f, h, preferred_element_type=jnp.float32)             # (C, 2)
                out = jax.nn.sigmoid(y[:, 0:1] + y[:, 1:2])          # (C, 1)
                o_ref[b:b + 1] = out[None].astype(o_ref.dtype)       # (1, C, 1)

    cost = pl.CostEstimate(
        flops=2 * N * C * HW + 8 * N * C * Ch,
        transcendentals=N * C,
        bytes_accessed=N * C * HW * itemsize + 2 * C * Ch * 4 + N * C * itemsize,
    )

    out = pl.pallas_call(
        kernel,
        out_shape=jax.ShapeDtypeStruct((N, C, 1), x_nchw.dtype),
        grid_spec=pltpu.PrefetchScalarGridSpec(
            num_scalar_prefetch=0,
            grid=(NB, num_k),
            in_specs=[
                pl.BlockSpec((TB, C, THW), lambda nb, k: (nb, 0, k)),
                pl.BlockSpec((Ch, C), lambda nb, k: (0, 0)),
                pl.BlockSpec((C, Ch), lambda nb, k: (0, 0)),
            ],
            out_specs=pl.BlockSpec((TB, C, 1), lambda nb, k: (nb, 0, 0)),
            scratch_shapes=[
                pltpu.VMEM((TB, C, 1), jnp.float32),   # running sum
                pltpu.VMEM((TB, C, 1), jnp.float32),   # running max
            ],
        ),
        compiler_params=pltpu.CompilerParams(
            dimension_semantics=("parallel", "arbitrary"),
            vmem_limit_bytes=32 << 20,   # 4 MiB blocks double-buffered fit everywhere (v5e/v6e/v7x)
        ),
        cost_estimate=cost,
    )(x_flat, w1, w2)

    return out.reshape(N, C, 1, 1)


def channel_attention_ref(x_nchw, w1, w2):
    """Pure-JAX reference mirroring the PyTorch forward."""
    avg = jnp.mean(x_nchw, axis=(2, 3))          # (N, C)
    mx = jnp.max(x_nchw, axis=(2, 3))            # (N, C)

    def se(p):
        return jnp.maximum(p @ w1.T, 0.0) @ w2.T

    return jax.nn.sigmoid(se(avg) + se(mx))[:, :, None, None]


if __name__ == "__main__":
    key = jax.random.PRNGKey(0)
    kx, k1, k2, kx2 = jax.random.split(key, 4)

    # in_planes must be >= 16 (hidden = C // 16).
    N, C, H, W = 2, 32, 20, 20       # HW = 400
    Ch = C // 16

    x = jax.random.normal(kx, (N, C, H, W), dtype=jnp.float32)
    w1 = jax.random.normal(k1, (Ch, C), dtype=jnp.float32) * 0.1   # fc1.weight[:, :, 0, 0]
    w2 = jax.random.normal(k2, (C, Ch), dtype=jnp.float32) * 0.1   # fc2.weight[:, :, 0, 0]

    y_ref = channel_attention_ref(x, w1, w2)

    # Auto tiling (single full-extent spatial block, TB chosen automatically).
    y_auto = jax.block_until_ready(channel_attention(x, w1, w2))
    assert y_auto.shape == (N, C, 1, 1), y_auto.shape
    assert jnp.allclose(y_auto, y_ref, atol=1e-5, rtol=1e-5), \
        float(jnp.max(jnp.abs(y_auto - y_ref)))

    # Forced spatial tiling: 4 tiles of 128, ragged last tile -> masked last-tile path.
    y_tiled = jax.block_until_ready(channel_attention(x, w1, w2, tile_hw=128))
    assert jnp.allclose(y_tiled, y_ref, atol=1e-5, rtol=1e-5), \
        float(jnp.max(jnp.abs(y_tiled - y_ref)))

    # Small-HW / larger-N regime -> exercises batch tiling (TB > 1).
    N2, H2, W2 = 4, 7, 7             # HW = 49, full-extent non-128 spatial block
    x2 = jax.random.normal(kx2, (N2, C, H2, W2), dtype=jnp.float32)
    y2_ref = channel_attention_ref(x2, w1, w2)

    y2_auto = jax.block_until_ready(channel_attention(x2, w1, w2))        # auto -> TB=2, 2 batch blocks
    assert jnp.allclose(y2_auto, y2_ref, atol=1e-5, rtol=1e-5), \
        float(jnp.max(jnp.abs(y2_auto - y2_ref)))

    y2_tb4 = jax.block_until_ready(channel_attention(x2, w1, w2, tile_b=4))  # TB = N (single block)
    assert jnp.allclose(y2_tb4, y2_ref, atol=1e-5, rtol=1e-5), \
        float(jnp.max(jnp.abs(y2_tb4 - y2_ref)))

    print("KERNEL_OK")
</pallas_src>

<mosaic_0001>
module attributes {stable_mosaic.version = 11 : i64} {
  func.func @kernel(%arg0: i32, %arg1: i32, %arg2: memref<1x32x400xf32, #tpu.memory_space<vmem>>, %arg3: memref<2x32xf32, #tpu.memory_space<vmem>>, %arg4: memref<32x2xf32, #tpu.memory_space<vmem>>, %arg5: memref<1x32x1xf32, #tpu.memory_space<vmem>>, %arg6: memref<1x32x1xf32, #tpu.memory_space<vmem>>, %arg7: memref<1x32x1xf32, #tpu.memory_space<vmem>>) attributes {dimension_semantics = [#tpu.dimension_semantics<parallel>, #tpu.dimension_semantics<arbitrary>], iteration_bounds = array<i64: 2, 1>, scalar_prefetch = 0 : i64, scratch_operands = 2 : i64, tpu.core_type = #tpu.core_type<tc>, window_params = [{transform_indices = @transform_0, window_bounds = array<i64: 1, 32, 400>}, {pipeline_mode = #tpu.pipeline_mode<synchronous>, transform_indices = @transform_1, window_bounds = array<i64: 2, 32>}, {pipeline_mode = #tpu.pipeline_mode<synchronous>, transform_indices = @transform_2, window_bounds = array<i64: 32, 2>}, {transform_indices = @transform_3, window_bounds = array<i64: 1, 32, 1>}]} {
    %c0_i32 = arith.constant 0 : i32
    %0 = arith.cmpi eq, %arg1, %c0_i32 : i32
    %1 = arith.extui %0 : i1 to i32
    %c0_i32_0 = arith.constant 0 : i32
    %2 = arith.cmpi ne, %1, %c0_i32_0 : i32
    scf.if %2 {
      %cst_18 = arith.constant 0.000000e+00 : f32
      %17 = vector.broadcast %cst_18 : f32 to vector<1x32x1xf32>
      %c0_19 = arith.constant 0 : index
      %c0_20 = arith.constant 0 : index
      %c0_21 = arith.constant 0 : index
      %18 = vector.load %arg6[%c0_19, %c0_20, %c0_21] : memref<1x32x1xf32, #tpu.memory_space<vmem>>, vector<1x32x1xf32>
      tpu.vector_store %arg6[%c0_19, %c0_20, %c0_21], %17 {strides = array<i32>} : memref<1x32x1xf32, #tpu.memory_space<vmem>>, vector<1x32x1xf32>,
      %cst_22 = arith.constant 0xFF800000 : f32
      %19 = vector.broadcast %cst_22 : f32 to vector<1x32x1xf32>
      %c0_23 = arith.constant 0 : index
      %c0_24 = arith.constant 0 : index
      %c0_25 = arith.constant 0 : index
      %20 = vector.load %arg7[%c0_23, %c0_24, %c0_25] : memref<1x32x1xf32, #tpu.memory_space<vmem>>, vector<1x32x1xf32>
      tpu.vector_store %arg7[%c0_23, %c0_24, %c0_25], %19 {strides = array<i32>} : memref<1x32x1xf32, #tpu.memory_space<vmem>>, vector<1x32x1xf32>,
    } else {
    }
    %c0 = arith.constant 0 : index
    %c0_1 = arith.constant 0 : index
    %c0_2 = arith.constant 0 : index
    %3 = vector.load %arg2[%c0, %c0_1, %c0_2] : memref<1x32x400xf32, #tpu.memory_space<vmem>>, vector<1x32x400xf32>
    %c0_3 = arith.constant 0 : index
    %c0_4 = arith.constant 0 : index
    %c0_5 = arith.constant 0 : index
    %4 = vector.load %arg6[%c0_3, %c0_4, %c0_5] : memref<1x32x1xf32, #tpu.memory_space<vmem>>, vector<1x32x1xf32>
    %cst = arith.constant dense<0.000000e+00> : vector<1x32xf32>
    %5 = vector.multi_reduction <add>, %3, %cst [2] : vector<1x32x400xf32> to vector<1x32xf32>
    %6 = vector.shape_cast %5 : vector<1x32xf32> to vector<1x32x1xf32>
    %7 = arith.addf %4, %6 : vector<1x32x1xf32>
    %c0_6 = arith.constant 0 : index
    %c0_7 = arith.constant 0 : index
    %c0_8 = arith.constant 0 : index
    %8 = vector.load %arg6[%c0_6, %c0_7, %c0_8] : memref<1x32x1xf32, #tpu.memory_space<vmem>>, vector<1x32x1xf32>
    tpu.vector_store %arg6[%c0_6, %c0_7, %c0_8], %7 {strides = array<i32>} : memref<1x32x1xf32, #tpu.memory_space<vmem>>, vector<1x32x1xf32>,
    %c0_9 = arith.constant 0 : index
    %c0_10 = arith.constant 0 : index
    %c0_11 = arith.constant 0 : index
    %9 = vector.load %arg7[%c0_9, %c0_10, %c0_11] : memref<1x32x1xf32, #tpu.memory_space<vmem>>, vector<1x32x1xf32>
    %cst_12 = arith.constant dense<0xFF800000> : vector<1x32xf32>
    %10 = vector.multi_reduction <maximumf>, %3, %cst_12 [2] : vector<1x32x400xf32> to vector<1x32xf32>
    %11 = vector.shape_cast %10 : vector<1x32xf32> to vector<1x32x1xf32>
    %12 = arith.maximumf %9, %11 : vector<1x32x1xf32>
    %c0_13 = arith.constant 0 : index
    %c0_14 = arith.constant 0 : index
    %c0_15 = arith.constant 0 : index
    %13 = vector.load %arg7[%c0_13, %c0_14, %c0_15] : memref<1x32x1xf32, #tpu.memory_space<vmem>>, vector<1x32x1xf32>
    tpu.vector_store %arg7[%c0_13, %c0_14, %c0_15], %12 {strides = array<i32>} : memref<1x32x1xf32, #tpu.memory_space<vmem>>, vector<1x32x1xf32>,
    %c0_i32_16 = arith.constant 0 : i32
    %14 = arith.cmpi eq, %arg1, %c0_i32_16 : i32
    %15 = arith.extui %14 : i1 to i32
    %c0_i32_17 = arith.constant 0 : i32
    %16 = arith.cmpi ne, %15, %c0_i32_17 : i32
    scf.if %16 {
      %c0_18 = arith.constant 0 : index
      %c0_19 = arith.constant 0 : index
      %17 = vector.load %arg3[%c0_18, %c0_19] : memref<2x32xf32, #tpu.memory_space<vmem>>, vector<2x32xf32>
      %c0_20 = arith.constant 0 : index
      %c0_21 = arith.constant 0 : index
      %18 = vector.load %arg4[%c0_20, %c0_21] : memref<32x2xf32, #tpu.memory_space<vmem>>, vector<32x2xf32>
      %c0_22 = arith.constant 0 : index
      %c0_23 = arith.constant 0 : index
      %c0_24 = arith.constant 0 : index
      %19 = vector.load %arg6[%c0_22, %c0_23, %c0_24] : memref<1x32x1xf32, #tpu.memory_space<vmem>>, vector<1x32x1xf32>
      %20 = vector.shape_cast %19 : vector<1x32x1xf32> to vector<32x1xf32>
      %cst_25 = arith.constant 2.500000e-03 : f32
      %21 = vector.broadcast %cst_25 : f32 to vector<32x1xf32>
      %22 = arith.mulf %20, %21 : vector<32x1xf32>
      %c0_26 = arith.constant 0 : index
      %c0_27 = arith.constant 0 : index
      %c0_28 = arith.constant 0 : index
      %23 = vector.load %arg7[%c0_26, %c0_27, %c0_28] : memref<1x32x1xf32, #tpu.memory_space<vmem>>, vector<1x32x1xf32>
      %24 = vector.shape_cast %23 : vector<1x32x1xf32> to vector<32x1xf32>
      %25 = tpu.concatenate %22, %24 in 1 : vector<32x1xf32>, vector<32x1xf32> -> vector<32x2xf32>
      %cst_29 = arith.constant dense<0.000000e+00> : vector<2x2xf32>
      %26 = tpu.matmul %17, %25, %cst_29 {dimension_numbers = #tpu.dot_dimension_numbers<[1], [0], [0], [1], [0, 0, 1, 1], [], []>} : vector<2x32xf32>, vector<32x2xf32>, vector<2x2xf32> -> vector<2x2xf32>
      %cst_30 = arith.constant 0.000000e+00 : f32
      %27 = vector.broadcast %cst_30 : f32 to vector<2x2xf32>
      %28 = arith.maximumf %26, %27 : vector<2x2xf32>
      %cst_31 = arith.constant dense<0.000000e+00> : vector<32x2xf32>
      %29 = tpu.matmul %18, %28, %cst_31 {dimension_numbers = #tpu.dot_dimension_numbers<[1], [0], [0], [1], [0, 0, 1, 1], [], []>} : vector<32x2xf32>, vector<2x2xf32>, vector<32x2xf32> -> vector<32x2xf32>
      %30 = vector.extract_strided_slice %29 {offsets = [0, 0], sizes = [32, 1], strides = [1, 1]} : vector<32x2xf32> to vector<32x1xf32>
      %31 = vector.extract_strided_slice %29 {offsets = [0, 1], sizes = [32, 1], strides = [1, 1]} : vector<32x2xf32> to vector<32x1xf32>
      %32 = arith.addf %30, %31 : vector<32x1xf32>
      %33 = arith.negf %32 : vector<32x1xf32>
      %34 = math.exp %33 : vector<32x1xf32>
      %cst_32 = arith.constant 1.000000e+00 : f32
      %35 = vector.broadcast %cst_32 : f32 to vector<32x1xf32>
      %36 = arith.addf %35, %34 : vector<32x1xf32>
      %37 = arith.divf %35, %36 : vector<32x1xf32>
      %38 = vector.shape_cast %37 : vector<32x1xf32> to vector<1x32x1xf32>
      %c0_33 = arith.constant 0 : index
      %c0_34 = arith.constant 0 : index
      %c0_35 = arith.constant 0 : index
      %39 = vector.load %arg5[%c0_33, %c0_34, %c0_35] : memref<1x32x1xf32, #tpu.memory_space<vmem>>, vector<1x32x1xf32>
      tpu.vector_store %arg5[%c0_33, %c0_34, %c0_35], %38 {strides = array<i32>} : memref<1x32x1xf32, #tpu.memory_space<vmem>>, vector<1x32x1xf32>,
    } else {
    }
    return
  }
  func.func @transform_0(%arg0: i32, %arg1: i32) -> (i32, i32, i32) {
    %c0_i32 = arith.constant 0 : i32
    %c0_i32_0 = arith.constant 0 : i32
    return %arg0, %c0_i32, %arg1 : i32, i32, i32
  }
  func.func @transform_1(%arg0: i32, %arg1: i32) -> (i32, i32) {
    %c0_i32 = arith.constant 0 : i32
    %c0_i32_0 = arith.constant 0 : i32
    %c0_i32_1 = arith.constant 0 : i32
    return %c0_i32, %c0_i32_0 : i32, i32
  }
  func.func @transform_2(%arg0: i32, %arg1: i32) -> (i32, i32) {
    %c0_i32 = arith.constant 0 : i32
    %c0_i32_0 = arith.constant 0 : i32
    %c0_i32_1 = arith.constant 0 : i32
    return %c0_i32, %c0_i32_0 : i32, i32
  }
  func.func @transform_3(%arg0: i32, %arg1: i32) -> (i32, i32, i32) {
    %c0_i32 = arith.constant 0 : i32
    %c0_i32_0 = arith.constant 0 : i32
    %c0_i32_1 = arith.constant 0 : i32
    return %arg0, %c0_i32, %c0_i32_0 : i32, i32, i32
  }
}

</mosaic_0001>

<bundles_post_ra>
// kernel: tpu_custom_call.1
= control target key start
LH: loop header
LB: loop body
LE: loop exit
PB: predicated region body
PF: predicated region fallthrough
CT: control target
= control target key end

     0   :  { %8 = vsyncpa [#allocation5], 0  ;;  %s1103_s0 = inlined_call_operand.hbm [shape: f32[2,32,400], index: 0, kind: input, shape index: {}]   ;;  %s1104_s1 = inlined_call_operand.vmem [shape: f32[2,32], index: 1, kind: input, shape index: {}]   ;;  %s1105_s2 = inlined_call_operand.vmem [shape: f32[32,2], index: 2, kind: input, shape index: {}]   ;;  %s1106_s3 = inlined_call_operand.vmem [shape: f32[2,32,1], index: 3, kind: output, shape index: {}]  }
   0x1   :  { %10 = vsyncpa [#allocation5 + $0x1], 0  ;;  %s914_s12 = smov 0   ;;  %s916_s13 = smov 0  }
   0x2   :  { %s918_s14 = smov 0   ;;  %s920_s15 = smov 0  }
   0x3   :  { %s922_s16 = smov 0   ;;  %s924_s17 = smov 0  }
   0x4 LB: > { %s654_s18 = sadd.s32 4294967295, %s883_s17   ;;  %s28_s19 = sadd.s32 1, %s879_s16  ;;  %s883_s17 = sphi %s924_s17, %s16_s17   ;;  %s879_s16 = sphi %s922_s16, %s1114_s16   ;;  %s875_s15 = sphi %s920_s15, %s1113_s15   ;;  %s871_s14 = sphi %s918_s14, %s1112_s14   ;;  %s867_s13 = sphi %s916_s13, %s1111_s13   ;;  %s863_s12 = sphi %s914_s12, %s1110_s12  }
   0x5   : > { %p30_p0 = scmp.ge.s32.totalorder %s28_s19, 2  ;;  %s37_s20 = sadd.s32 1, %s871_s14 }
   0x6   : > { %p44_p1 = scmp.ne.s32.totalorder %s871_s14, %s867_s13  ;;  %p45_p2 = scmp.eq.s32.totalorder %s883_s17, 0 }
   0x7   : > { %s1116_s19 = smov (%p30_p0, %s28_s19), 0  ;;  %p50_p4 = scmp.ne.s32.totalorder %s867_s13, %s863_s12 }
   0x8   : > { %p950_p3 = por %p45_p2, %p44_p1  ;;  %s32_s22 = ssub.s32 %s879_s16, %s1116_s19 }
   0x9   : > { %p51_p5 = scmp.eq.s32.totalorder %s654_s18, 0  ;;  %p35_p6 = scmp.eq.s32.totalorder %s32_s22, 0 }
   0xa   : > { %p720_p8 = scmp.lt.s32.totalorder %s883_s17, 2  ;;  %s148_s25 = sand.u32 1, %s871_s14  }
   0xb   : > { %p957_p7 = por %p51_p5, %p50_p4  ;;  %s677_s26 = sshll.u32 %s879_s16, 11 }
   0xc   : > { %s963_s24 = scalar_select %p35_p6, %s871_s14, %s37_s20  }
   0xd   : > { %s658_s27 = sshll.u32 %s148_s25, 7  ;;  %s970_s30 = scalar_lea.hbm %s1103_s0, %s677_s26 }
   0xe   : > { %s152_s4 = scalar_lea.vmem [#allocation4], %s658_s27  ;;  %p974_p9 = pnand %p720_p8, %p950_p3 }
   0xf   : > { %s161_s5 = sshll.u32 %s152_s4, 4  ;;  %s980_s7 = scalar_lea.sflag [#allocation5], %s148_s25  ;;  %s978_s5 = int_to_ptr.vmem [resolvable:$true] %s161_s5 }
  0x10   : > { %s803_s8 = scalar_lea.hbm %s970_s30, 2048  ;;  %p805_p11 = pneg %p974_p9 }
  0x11   : > { %p804_p10 = scmp.ne.s32.totalorder %s970_s30, %s803_s8  ;;  %s808_s11 = scalar_lea.hbm %s1103_s0, 4096 }
  0x12   : > { %p809_p0 = scmp.lt.u32.totalorder %s970_s30, %s1103_s0  ;;  %p810_p1 = scmp.lt.u32.totalorder %s808_s11, %s803_s8 }
  0x13   : > { %p806_p12 = pnand %p805_p11, %p804_p10  ;;  %p812_p3 = scmp.lt.u32.totalorder %s803_s8, %s970_s30 }
  0x14   : > { %p811_p2 = por %p810_p1, %p809_p0 }
  0x15   : > { %p807_p13 = pneg %p806_p12 }
  0x16   : > { %p813_p4 = por %p812_p3, %p811_p2 }
  0x18   : > { %p814_p5 = pnand %p813_p4, %p807_p13 }
  0x1a   : > { %817 = shalt.err (!%p814_p5)
}
  0x1b   : > { %s818_s20 = scalar_lea.vmem %s978_s5, 2048  ;;  %s885_s21 = smov [#allocation4]  }
  0x1c   : > { %p819_p6 = scmp.ne.s32.totalorder %s978_s5, %s818_s20  ;;  %s823_s22 = sshll.u32 %s885_s21, 4  ;;  %s824_s22 = int_to_ptr.vmem [resolvable:$false] %s823_s22 }
  0x1d   : > { %s825_s25 = scalar_lea.vmem %s824_s22, 4096  ;;  %p826_p12 = scmp.lt.s32.totalorder %s978_s5, %s824_s22 }
  0x1e   : > { %p821_p8 = pnand %p819_p6, %p805_p11  ;;  %p827_p0 = scmp.lt.s32.totalorder %s825_s25, %s818_s20 }
  0x20   : > { %p822_p10 = pneg %p821_p8  ;;  %p828_p1 = por %p827_p0, %p826_p12 }
  0x22   : > { %p829_p2 = pnand %p828_p1, %p822_p10 }
  0x24   : > { %832 = shalt.err (!%p829_p2)
}
  0x25   : > { %s886_s26 = smov 512   ;;  %s887_s27 = smov 32  }
  0x26   : > { %719 = dma.hbm_to_vmem [thread:$0]  (!%p974_p9), %s970_s30, 2048, %s978_s5, %s980_s7, %s886_s26, %s886_s26, %s887_s27  }
  0x27   : > { %p661_p11 = scmp.ge.s32.totalorder %s883_s17, 1  ;;  %p169_p13 = scmp.lt.s32.totalorder %s883_s17, 3 }
  0x29   : > { %p170_p3 = pnand %p661_p11, %p169_p13 }
  0x2a   : > { %s175_s28 = sand.u32 (!%p170_p3), 1, %s867_s13  }
  0x2b   : > { %173 = sbr.rel (%p170_p3) target bundleno = 925 (0x39d), region = 32  ;;  %s662_s29 = sshll.u32 (!%p170_p3), %s175_s28, 7 }
  0x2c   : > { %s176_s4 = scalar_lea.sflag (!%p170_p3), [#allocation5], %s175_s28  ;;  %s1011_s8 = scalar_lea.vmem (!%p170_p3), [#allocation4], %s662_s29 }
  0x32   : > { %858 = dma.done.wait (%p957_p7), %s176_s4, 2048  }
  0x33   : > { %860 = vsyncadd (%p957_p7), %s176_s4, 4294965248  ;;  %vm212_vm0 = vcmask 7168   ;;  %v888_v0 = vmov -inf   ;;  %vm243_vm1 = vcmask 130048   ;;  %v229_v1 = vld [vmem:[%s1011_s8 + $0x40] sm:$0xff]  ;;  %v230_v2 = vld [vmem:[%s1011_s8 + $0x48] sm:$0xff] }
  0x34   : > { %219 = vst.msk [vmem:[#allocation3 + $0x10] sm:$0xff] %vm212_vm0, %v888_v0  ;;  %217 = vst.msk [vmem:[#allocation3] sm:$0xff] %vm212_vm0, %v888_v0  ;;  %v231_v3 = vld [vmem:[%s1011_s8 + $0x50] sm:$0xff]  ;;  %v232_v4 = vld [vmem:[%s1011_s8 + $0x58] sm:$0xff]  ;;  %v291_v5 = vmax.f32 %v229_v1, %v230_v2  ;;  %v254_v38 = vadd.f32 %v230_v2, %v229_v1  ;;  %v889_v49 = vmov 0.0   ;;  %v890_v63 = vmov 0.0|0.0  }
  0x35   : > { %218 = vst.msk [vmem:[#allocation3 + $0x8] sm:$0xff] %vm212_vm0, %v888_v0  ;;  %220 = vst.msk [vmem:[#allocation3 + $0x18] sm:$0xff] %vm212_vm0, %v888_v0  ;;  %v221_v6 = vld [vmem:[%s1011_s8] sm:$0xff]  ;;  %v222_v7 = vld [vmem:[%s1011_s8 + $0x8] sm:$0xff]  ;;  %v293_v8 = vsel %vm243_vm1, %v232_v4, -inf  ;;  %v256_v46 = vsel %vm243_vm1, %v232_v4, 0.0  ;;  %708 = vmatprep.subr.bf16.mxu0 %v890_v63 }
  0x36   : > { %v223_v9 = vld [vmem:[%s1011_s8 + $0x10] sm:$0xff]  ;;  %v224_v10 = vld [vmem:[%s1011_s8 + $0x18] sm:$0xff]  ;;  %v279_v11 = vmax.f32 %v221_v6, %v222_v7  ;;  %v233_v12 = vld [vmem:[%s1011_s8 + $0x60] sm:$0xff]  ;;  %v292_v13 = vmax.f32 %v291_v5, %v231_v3  ;;  %v241_v23 = vadd.f32 %v222_v7, %v221_v6  ;;  %v255_v45 = vadd.f32 %v254_v38, %v231_v3  ;;  %214 = vst.msk [vmem:[#allocation2 + $0x8] sm:$0xff] %vm212_vm0, %v889_v49  ;;  %s892_s23 = smov 1   ;;  %s893_s21 = smov 127  }
  0x37   : > { %v281_v14 = vsel %vm243_vm1, %v224_v10, -inf  ;;  %v234_v15 = vld [vmem:[%s1011_s8 + $0x68] sm:$0xff]  ;;  %v235_v16 = vld [vmem:[%s1011_s8 + $0x70] sm:$0xff]  ;;  %v236_v17 = vld [vmem:[%s1011_s8 + $0x78] sm:$0xff]  ;;  %v244_v40 = vsel %vm243_vm1, %v224_v10, 0.0  ;;  %213 = vst.msk [vmem:[#allocation2] sm:$0xff] %vm212_vm0, %v889_v49 }
  0x38   : > { %v280_v18 = vmax.f32 %v279_v11, %v223_v9  ;;  %v297_v19 = vmax.f32 %v233_v12, %v234_v15  ;;  %v225_v20 = vld [vmem:[%s1011_s8 + $0x20] sm:$0xff]  ;;  %v226_v21 = vld [vmem:[%s1011_s8 + $0x28] sm:$0xff]  ;;  %v227_v22 = vld [vmem:[%s1011_s8 + $0x30] sm:$0xff]  ;;  %v294_v24 = vmax.f32 %v292_v13, %v293_v8  ;;  %v299_v25 = vsel %vm243_vm1, %v236_v17, -inf  ;;  %215 = vst.msk [vmem:[#allocation2 + $0x10] sm:$0xff] %vm212_vm0, %v889_v49  ;;  %p203_p7 = scmp.lt.s32.totalorder %s875_s15, 1 }
  0x39   : > { %v228_v26 = vld [vmem:[%s1011_s8 + $0x38] sm:$0xff]  ;;  %v285_v27 = vmax.f32 %v225_v20, %v226_v21  ;;  %v248_v28 = vadd.f32 %v226_v21, %v225_v20  ;;  %v260_v34 = vadd.f32 %v234_v15, %v233_v12  ;;  %v242_v37 = vadd.f32 %v241_v23, %v223_v9  ;;  %216 = vst.msk [vmem:[#allocation2 + $0x18] sm:$0xff] %vm212_vm0, %v889_v49  ;;  %v315_v38 = vld [vmem:[%s1105_s2] sm:$0xff] }
  0x3a   : > { %v282_v29 = vmax.f32 %v280_v18, %v281_v14  ;;  %v298_v30 = vmax.f32 %v297_v19, %v235_v16  ;;  %v287_v31 = vsel %vm243_vm1, %v228_v26, -inf  ;;  %295 = vmax.xlane.f32.xlu1 %v294_v24  ;;  %v250_v36 = vsel %vm243_vm1, %v228_v26, 0.0  ;;  %s1118_s15 = smov (!%p203_p7, %s875_s15), 1 }
  0x3b   : > { %v286_v32 = vmax.f32 %v285_v27, %v227_v22  ;;  %v249_v33 = vadd.f32 %v248_v28, %v227_v22  ;;  %v261_v42 = vadd.f32 %v260_v34, %v235_v16  ;;  %v245_v43 = vadd.f32 %v244_v40, %v242_v37  ;;  %v277_v50 = vld [vmem:[#allocation3 + $0x10] sm:$0xff]  ;;  %v275_v51 = vld [vmem:[#allocation3] sm:$0xff]  ;;  %s678_s22 = sshll.u32 %s1118_s15, 5 }
  0x3c   : > { %283 = vmax.xlane.f32.xlu0 %v282_v29  ;;  %v300_v35 = vmax.f32 %v298_v30, %v299_v25  ;;  %v262_v44 = vsel %vm243_vm1, %v236_v17, 0.0  ;;  %v257_v48 = vadd.f32 %v256_v46, %v255_v45  ;;  %v278_v56 = vld [vmem:[#allocation3 + $0x18] sm:$0xff]  ;;  %v276_v57 = vld [vmem:[#allocation3 + $0x8] sm:$0xff]  ;;  %vm891_vm2 = vmmov 0   ;;  %v314_v37 = vld [vmem:[%s1104_s1] sm:$0x3]  ;;  %s207_s27 = scalar_lea.vmem %s1106_s3, %s678_s22 }
  0x3d   : > { %v288_v39 = vmax.f32 %v286_v32, %v287_v31  ;;  %v251_v41 = vadd.f32 %v250_v36, %v249_v33  ;;  %v263_v47 = vadd.f32 %v262_v44, %v261_v42  ;;  %v238_v62 = vld [vmem:[#allocation2 + $0x8] sm:$0xff]  ;;  %697 = vmatprep.mubr.msk.f32.mxu0 %vm891_vm2, %v889_v49  ;;  %vm351_vm3 = vcmask 261120   ;;  %v318_v44 = vld [vmem:[%s1105_s2 + $0x18] sm:$0xff] }
  0x3e   : > { %301 = vmax.xlane.f32.xlu1 %v300_v35  ;;  %v237_v0 = vld [vmem:[#allocation2] sm:$0xff]  ;;  %vm426_vm4 = vcmask 15360   ;;  %vm439_vm5 = vcmask 1041408   ;;  %v316_v42 = vld [vmem:[%s1105_s2 + $0x8] sm:$0xff] }
  0x3f   : > { %v239_v6 = vld [vmem:[#allocation2 + $0x10] sm:$0xff]  ;;  %702 = vmatprep.mubr.msk.f32.mxu1 %vm426_vm4, %v315_v38 }
  0x40   : > { %289 = vmax.xlane.f32.xlu0 %v288_v39  ;;  %v240_v5 = vld [vmem:[#allocation2 + $0x18] sm:$0xff] }
  0x42   : > { %252 = vadd.xlane.f32.xlu1 %v251_v41 }
  0x44   : > { %246 = vadd.xlane.f32.xlu0 %v245_v43  ;;  %v317_v43 = vld [vmem:[%s1105_s2 + $0x10] sm:$0xff] }
  0x46   : > { %264 = vadd.xlane.f32.xlu1 %v263_v47 }
  0x48   : > { %258 = vadd.xlane.f32.xlu0 %v257_v48 }
  0xc7   : > { %v296_v52 = vpop.xlane.xlu1 %295 }
  0xc8   : > { %v305_v53 = vmax.f32 %v277_v50, %v296_v52 }
  0xc9   : > { %v284_v54 = vpop.xlane.xlu0 %283 }
  0xca   : > { %v303_v55 = vmax.f32 %v275_v51, %v284_v54  ;;  %309 = vst.msk [vmem:[#allocation3 + $0x10] sm:$0xff] %vm212_vm0, %v305_v53 }
  0xcb   : > { %v302_v58 = vpop.xlane.xlu1 %301 }
  0xcc   : > { %307 = vst.msk [vmem:[#allocation3] sm:$0xff] %vm212_vm0, %v303_v55  ;;  %v306_v59 = vmax.f32 %v278_v56, %v302_v58 }
  0xcd   : > { %v290_v60 = vpop.xlane.xlu0 %289 }
  0xce   : > { %v304_v61 = vmax.f32 %v276_v57, %v290_v60  ;;  %310 = vst.msk [vmem:[#allocation3 + $0x18] sm:$0xff] %vm212_vm0, %v306_v59 }
  0xcf   : > { %v253_v1 = vpop.xlane.xlu1 %252 }
  0xd0   : > { %308 = vst.msk [vmem:[#allocation3 + $0x8] sm:$0xff] %vm212_vm0, %v304_v61  ;;  %v267_v2 = vadd.f32 %v253_v1, %v238_v62 }
  0xd1   : > { %v247_v3 = vpop.xlane.xlu0 %246  ;;  %v329_v7 = vld [vmem:[#allocation3 + $0x10] sm:$0xff] }
  0xd2   : > { %v266_v4 = vadd.f32 %v247_v3, %v237_v0  ;;  %272 = vst.msk [vmem:[#allocation2 + $0x8] sm:$0xff] %vm212_vm0, %v267_v2 }
  0xd3   : > { %v265_v8 = vpop.xlane.xlu1 %264  ;;  %v327_v14 = vld [vmem:[#allocation3] sm:$0xff] }
  0xd4   : > { %271 = vst.msk [vmem:[#allocation2] sm:$0xff] %vm212_vm0, %v266_v4  ;;  %v269_v9 = vadd.f32 %v265_v8, %v240_v5 }
  0xd5   : > { %v259_v10 = vpop.xlane.xlu0 %258  ;;  %v330_v11 = vld [vmem:[#allocation3 + $0x18] sm:$0xff] }
  0xd6   : > { %v268_v12 = vadd.f32 %v259_v10, %v239_v6  ;;  %v782_v13 = vpack.i.bf16 %v330_v11, %v329_v7  ;;  %274 = vst.msk [vmem:[#allocation2 + $0x18] sm:$0xff] %vm212_vm0, %v269_v9 }
  0xd7   : > { %v328_v15 = vld [vmem:[#allocation3 + $0x8] sm:$0xff] }
  0xd8   : > { %v777_v16 = vpack.i.bf16 %v328_v15, %v327_v14  ;;  %273 = vst.msk [vmem:[#allocation2 + $0x10] sm:$0xff] %vm212_vm0, %v268_v12  ;;  %783 = vrot.lane.b32.xlu1 %v782_v13, %s892_s23 }
  0xd9   : > { %v320_v18 = vld [vmem:[#allocation2 + $0x8] sm:$0xff] }
  0xda   : > { %778 = vrot.lane.b32.xlu0 %v777_v16, %s892_s23  ;;  %v324_v23 = vmul.f32 0.0025, %v320_v18 }
  0xdb   : > { %v319_v17 = vld [vmem:[#allocation2] sm:$0xff] }
  0xdc   : > { %v323_v22 = vmul.f32 0.0025, %v319_v17 }
  0xdd   : > { %v322_v20 = vld [vmem:[#allocation2 + $0x18] sm:$0xff] }
  0xde   : > { %v326_v26 = vmul.f32 0.0025, %v322_v20 }
  0xdf   : > { %v321_v19 = vld [vmem:[#allocation2 + $0x10] sm:$0xff] }
  0xe0   : > { %v325_v25 = vmul.f32 0.0025, %v321_v19 }
 0x14a   : > { %v784_v21 = vpop.permute.xlu1 %783 }
 0x14b   : > { %v786_v27 = vunpack.i.h.bf16 %v784_v21  ;;  %v785_v28 = vunpack.i.l.bf16 %v784_v21 }
 0x14c   : > { %v779_v24 = vpop.permute.xlu0 %778 }
 0x14d   : > { %v781_v29 = vunpack.i.h.bf16 %v779_v24  ;;  %v780_v30 = vunpack.i.l.bf16 %v779_v24  ;;  %v349_v34 = vsel %vm212_vm0, %v325_v25, %v785_v28  ;;  %v350_v35 = vsel %vm212_vm0, %v326_v26, %v786_v27 }
 0x14e   : > { %v712_v36 = vpack.c.bf16 %v350_v35, %v349_v34 }
 0x14f   : > { %v347_v31 = vsel %vm212_vm0, %v323_v22, %v780_v30  ;;  %v348_v32 = vsel %vm212_vm0, %v324_v23, %v781_v29 }
 0x150   : > { %v709_v33 = vpack.c.bf16 %v348_v32, %v347_v31 }
 0x152   : > { %710 = vmatpush3.bf16.msra.mxu0 %v709_v33 }
 0x153   : > { %711 = vmatprep.subr.bf16.mxu0 %v890_v63 }
 0x156   : > { %713 = vmatpush3.bf16.msra.mxu0 %v712_v36 }
 0x159   : > { %698 = vmatmul.mubr.msk.f32.vlgmr.msra.gmra.mrb[0].mxu0 %vm351_vm3, %v314_v37 }
 0x22c   : > { %v421_v39 = vpop.f32.mrb[0].mxu0 }
 0x22d   : > { %v425_v40 = vmax.f32 %v421_v39, 0.0  ;;  %v699_v41 = vpop.f32.mrb[1].mxu0 }
 0x22f   : > { %700 = vmatprep.subr.msk.mxu1 %vm439_vm5, %v425_v40 }
 0x230   : > { %701 = vmatpush3.msk.msra.mxu1 %vm439_vm5, %v425_v40 }
 0x231   : > { %703 = vmatmul.mubr.msk.f32.vlgmr.msra.gmra.mrb[0].mxu1 %vm426_vm4, %v316_v42 }
 0x232   : > { %705 = vmatprep.mubr.msk.f32.mxu1 %vm426_vm4, %v317_v43 }
 0x235   : > { %706 = vmatmul.mubr.msk.f32.gmra.mrb[2].mxu1 %vm426_vm4, %v318_v44 }
 0x304   : > { %v704_v45 = vpop.f32.mrb[0].mxu1 }
 0x305   : > { %534 = vrot.lane.b32.xlu1 %v704_v45, %s893_s21  ;;  %v509_v46 = vpop.f32.mrb[1].mxu1 }
 0x308   : > { %v707_v47 = vpop.f32.mrb[2].mxu1 }
 0x309   : > { %532 = vrot.lane.b32.xlu1 %v509_v46, %s893_s21  ;;  %v519_v48 = vpop.f32.mrb[3].mxu1 }
 0x30a   : > { %536 = vrot.lane.b32.xlu0 %v519_v48, %s893_s21 }
 0x30d   : > { %538 = vrot.lane.b32.xlu1 %v707_v47, %s893_s21 }
 0x377   : > { %v535_v49 = vpop.permute.xlu1 %534 }
 0x378   : > { %v545_v50 = vadd.f32 %v704_v45, %v535_v49 }
 0x37a   : > { %v672_v51 = vmul.f32 -1.442695, %v545_v50 }
 0x37b   : > { %v533_v52 = vpop.permute.xlu1 %532 }
 0x37c   : > { %787 = vpow2.f32 %v672_v51  ;;  %v544_v53 = vadd.f32 %v533_v52, %v509_v46  ;;  %v537_v54 = vpop.permute.xlu0 %536 }
 0x37d   : > { %v546_v55 = vadd.f32 %v537_v54, %v519_v48 }
 0x37e   : > { %v671_v56 = vmul.f32 -1.442695, %v544_v53 }
 0x37f   : > { %v673_v57 = vmul.f32 -1.442695, %v546_v55  ;;  %v539_v58 = vpop.permute.xlu1 %538 }
 0x380   : > { %789 = vpow2.f32 %v671_v56  ;;  %v547_v59 = vadd.f32 %v707_v47, %v539_v58 }
 0x381   : > { %791 = vpow2.f32 %v673_v57 }
 0x382   : > { %v674_v60 = vmul.f32 -1.442695, %v547_v59 }
 0x384   : > { %793 = vpow2.f32 %v674_v60 }
 0x386   : > { %v788_v61 = vpop.eup %787 }
 0x387   : > { %v561_v62 = vadd.f32 1.0, %v788_v61 }
 0x389   : > { %795 = vrcp.f32 %v561_v62 }
 0x38a   : > { %v790_v63 = vpop.eup %789 }
 0x38b   : > { %v792_v0 = vpop.eup %791  ;;  %v560_v1 = vadd.f32 1.0, %v790_v63 }
 0x38c   : > { %v562_v2 = vadd.f32 1.0, %v792_v0 }
 0x38d   : > { %797 = vrcp.f32 %v560_v1 }
 0x38e   : > { %v794_v3 = vpop.eup %793  ;;  %799 = vrcp.f32 %v562_v2 }
 0x38f   : > { %v563_v4 = vadd.f32 1.0, %v794_v3 }
 0x391   : > { %801 = vrcp.f32 %v563_v4 }
 0x393   : > { %v796_v5 = vpop.eup %795 }
 0x394   : > { %573 = vst.msk [vmem:[%s207_s27 + $0x8] sm:$0xff] %vm212_vm0, %v796_v5 }
 0x397   : > { %v798_v6 = vpop.eup %797 }
 0x398   : > { %v800_v7 = vpop.eup %799  ;;  %572 = vst.msk [vmem:[%s207_s27] sm:$0xff] %vm212_vm0, %v798_v6 }
 0x399   : > { %574 = vst.msk [vmem:[%s207_s27 + $0x10] sm:$0xff] %vm212_vm0, %v800_v7 }
 0x39b   : > { %v802_v8 = vpop.eup %801 }
 0x39c   : > { %575 = vst.msk [vmem:[%s207_s27 + $0x18] sm:$0xff] %vm212_vm0, %v802_v8 }
 0x39d PF: > { %s16_s17 = sadd.s32 1, %s883_s17   ;;  %s1110_s12 = smov %s867_s13 }
 0x39e   : > { %p13_p9 = scmp.ge.s32.totalorder %s16_s17, 4   ;;  %s1111_s13 = smov %s871_s14 }
 0x39f   : > { %s1112_s14 = smov %s963_s24  ;;  %s1113_s15 = smov %s879_s16 }
 0x3a0   : > { %s1114_s16 = smov %s1116_s19  ;;  %15 = sbr.rel (!%p13_p9) target bundleno = 4 (0x4), region = 80 }
 0x3a7   :  { %597 = vsyncpa [#allocation5], 1 }
 0x3a8   :  { %599 = vsyncpa [#allocation5 + $0x1], 1 }

</bundles_post_ra>
